<compile_context>
chip_gen: v7x
topology: tpu7x:2x2x1
jax: 0.10.0
libtpu: 0.0.40
codegen_flags: <defaults>
</compile_context>

<pallas_src>
import jax
import jax.numpy as jnp
from jax.experimental import pallas as pl
from jax.experimental.pallas import tpu as pltpu

ALPHABET_SIZE = 12   # input_size == output_size
HIDDEN_SIZE = 50
BATCH_SIZE = 1
N_LAYERS = 1         # CharRNN(..., batch_size) -> n_layers = 1

LANES = 128          # vreg lane width; everything is padded to this
NEG = -1.0e30        # "minus infinity" for padded softmax lanes

# Row layout of the packed parameter slab (all rows are 128 lanes wide,
# all region starts are multiples of 8 sublanes):
#   rows   0: 50 -> W_hh^T   (h occupies lanes  0:50  of the fused xh row)
#   rows  50:100 -> W_ih^T   (x occupies lanes 50:100 of the fused xh row)
#   row  128     -> b_ih + b_hh          (lanes 0:50, zero elsewhere)
#   row  129     -> b_h2o                (lanes 0:12, NEG elsewhere)
#   rows 136:264 -> W_h2o^T padded       (rows 0:50, cols 0:12 carry data)
ROW_WC = 0
ROW_BC = 128
ROW_BO = 129                 # same 8-row sublane group as ROW_BC -> one vld
ROW_WO = 136
SLAB_ROWS = ROW_WO + LANES   # 264


def _char_rnn_kernel(x_ref, h0_ref, p_ref, probs_ref, h_out_ref, h_sc):
    """T recurrent tanh-RNN steps; two MXU pushes per step, weights resident."""
    t = pl.program_id(0)
    last = pl.num_programs(0) - 1

    @pl.when(t == 0)
    def _():
        h_sc[...] = h0_ref[...]          # h0 in lanes 0:50, zeros elsewhere

    # Fused row [h | x | 0-pad]: h sits in lanes 0:50 (carry scratch), the
    # pre-padded input row carries x in lanes 50:100 -> a single VPU add.
    xh = x_ref[pl.ds(t, 1), :] + h_sc[...]                   # (1, 128)

    # Fused RNN cell: tanh([h|x] @ [W_hh^T ; W_ih^T] + (b_ih + b_hh)).
    # Padded lanes (>=50) of the result are exactly 0 (zero weight cols/bias).
    w_c = p_ref[ROW_WC:ROW_WC + LANES, :]                    # (128, 128)
    b_c = p_ref[ROW_BC:ROW_BC + 1, :]                        # (1, 128)
    h_full = jnp.tanh(
        jnp.dot(xh, w_c, preferred_element_type=jnp.float32) + b_c)
    h_sc[...] = h_full                   # carry for the next step (no roll)

    # h2o + softmax, lane-dense over all 128 lanes.  Padded lanes of the
    # output bias row are -1e30, so exp() underflows to exactly 0 there.
    w_o = p_ref[ROW_WO:ROW_WO + LANES, :]                    # (128, 128)
    b_o = p_ref[ROW_BO:ROW_BO + 1, :]                        # (1, 128)
    logits = jnp.dot(h_full, w_o, preferred_element_type=jnp.float32) + b_o
    m = jnp.max(logits, axis=-1, keepdims=True)
    e = jnp.exp(logits - m)
    probs_ref[pl.ds(t, 1), :] = e * pl.reciprocal(
        jnp.sum(e, axis=-1, keepdims=True))

    @pl.when(t == last)
    def _():
        h_out_ref[...] = h_full          # lane-dense (1, 128) final hidden


def pack_params(params):
    """One-time packing of all weights/biases into a single VMEM-friendly slab.

    Done at init (NOT in the forward path), so the per-call hot path carries
    no transpose/reshape ops and exactly one parameter DMA.
    """
    w_ih, b_ih, w_hh, b_hh, w_ho, b_ho = params
    slab = jnp.zeros((SLAB_ROWS, LANES), jnp.float32)
    # Fused RNN weight for the [h | x] layout: [W_hh^T ; W_ih^T]
    slab = slab.at[0:HIDDEN_SIZE, 0:HIDDEN_SIZE].set(w_hh.T)
    slab = slab.at[HIDDEN_SIZE:2 * HIDDEN_SIZE, 0:HIDDEN_SIZE].set(w_ih.T)
    # Combined RNN bias
    slab = slab.at[ROW_BC, 0:HIDDEN_SIZE].set(b_ih + b_hh)
    # Output bias: real classes in lanes 0:12, NEG elsewhere (softmax padding)
    b_out = jnp.full((LANES,), NEG, jnp.float32).at[0:ALPHABET_SIZE].set(b_ho)
    slab = slab.at[ROW_BO, :].set(b_out)
    # h2o weight W^T -> (50, 12), zero-padded to (128, 128)
    slab = slab.at[ROW_WO:ROW_WO + HIDDEN_SIZE, 0:ALPHABET_SIZE].set(w_ho.T)
    return slab


@jax.jit
def char_rnn_forward(xs, hidden, packed_params):
    """Run the CharRNN step recurrently over T tokens in one pallas_call.

    xs:     (T, hidden_size) f32  -- dense "early fusion" inputs, one per step
    hidden: (n_layers, batch, hidden_size) initial hidden state

    Returns (probs, hidden_new):
      probs:      (T, output_size) softmax output of every step
      hidden_new: (n_layers, batch, hidden_size) final hidden state
    With T == 1 this is exactly the PyTorch module's forward().
    """
    t_steps = xs.shape[0]
    # Pre-pad x into lanes 50:100 (its slot in the fused [h | x] row) once,
    # outside the kernel; fused with the pallas_call under jit.
    xs_pad = jnp.zeros((t_steps, LANES), jnp.float32)
    xs_pad = xs_pad.at[:, HIDDEN_SIZE:2 * HIDDEN_SIZE].set(xs)
    h0_pad = jnp.zeros((1, LANES), jnp.float32)
    h0_pad = h0_pad.at[:, 0:HIDDEN_SIZE].set(hidden.reshape(1, HIDDEN_SIZE))

    vmem = pl.BlockSpec(memory_space=pltpu.MemorySpace.VMEM)
    probs_pad, h_pad = pl.pallas_call(
        _char_rnn_kernel,
        grid=(t_steps,),
        out_shape=(
            jax.ShapeDtypeStruct((t_steps, LANES), jnp.float32),
            jax.ShapeDtypeStruct((1, LANES), jnp.float32),
        ),
        in_specs=[vmem, vmem, vmem],
        out_specs=(vmem, vmem),
        scratch_shapes=[pltpu.VMEM((1, LANES), jnp.float32)],  # hidden carry
        compiler_params=pltpu.CompilerParams(
            dimension_semantics=("arbitrary",)),                # recurrence
    )(xs_pad, h0_pad, packed_params)

    probs = probs_pad[:, :ALPHABET_SIZE]
    h_new = h_pad[:, :HIDDEN_SIZE].reshape(N_LAYERS, BATCH_SIZE, HIDDEN_SIZE)
    return probs, h_new


def init_params(key):
    """Deterministic parameter init (PyTorch-style U(-1/sqrt(H), 1/sqrt(H)))."""
    ks = jax.random.split(key, 6)
    bound = 1.0 / jnp.sqrt(jnp.float32(HIDDEN_SIZE))
    u = lambda k, shape: jax.random.uniform(
        k, shape, dtype=jnp.float32, minval=-bound, maxval=bound)
    w_ih = u(ks[0], (HIDDEN_SIZE, HIDDEN_SIZE))    # (out, in) like torch
    b_ih = u(ks[1], (HIDDEN_SIZE,))
    w_hh = u(ks[2], (HIDDEN_SIZE, HIDDEN_SIZE))
    b_hh = u(ks[3], (HIDDEN_SIZE,))
    w_ho = u(ks[4], (ALPHABET_SIZE, HIDDEN_SIZE))  # h2o Linear (out, in)
    b_ho = u(ks[5], (ALPHABET_SIZE,))
    return (w_ih, b_ih, w_hh, b_hh, w_ho, b_ho)


def _reference(xs, hidden, params):
    """Pure-JAX reference: the PyTorch forward() applied token by token."""
    w_ih, b_ih, w_hh, b_hh, w_ho, b_ho = params
    h = hidden.reshape(BATCH_SIZE, HIDDEN_SIZE)
    outs = []
    for t in range(xs.shape[0]):
        x = xs[t:t + 1]
        h = jnp.tanh(x @ w_ih.T + b_ih + h @ w_hh.T + b_hh)
        logits = h @ w_ho.T + b_ho
        outs.append(jax.nn.softmax(logits, axis=-1))
    return (jnp.concatenate(outs, axis=0),
            h.reshape(N_LAYERS, BATCH_SIZE, HIDDEN_SIZE))


# TODO(synk): the kernel keeps batch = 1 to match the module; if sequences can
# be batched, lift the row dimension of xh/probs to B (<=128 on v5e, <=256 on
# v6e/v7x) and mark the batch grid axis "parallel" to use both v7x TensorCores.

if __name__ == "__main__":
    key = jax.random.PRNGKey(0)
    k_param, k_x = jax.random.split(key)
    params = init_params(k_param)
    packed = pack_params(params)    # one-time packing, outside the hot path

    # "early-fusion one-hot" input: dense vector of width hidden_size per step
    SEQ_LEN = 8
    xs = jax.random.normal(k_x, (SEQ_LEN, HIDDEN_SIZE), dtype=jnp.float32)
    hidden0 = jnp.zeros((N_LAYERS, BATCH_SIZE, HIDDEN_SIZE), jnp.float32)

    ref_out, ref_hidden = _reference(xs, hidden0, params)

    out, hidden1 = char_rnn_forward(xs, hidden0, packed)
    out = jax.block_until_ready(out)
    hidden1 = jax.block_until_ready(hidden1)

    assert out.shape == (SEQ_LEN, ALPHABET_SIZE)
    assert hidden1.shape == (N_LAYERS, BATCH_SIZE, HIDDEN_SIZE)
    assert jnp.allclose(out, ref_out, atol=1e-5, rtol=1e-5)
    assert jnp.allclose(hidden1, ref_hidden, atol=1e-5, rtol=1e-5)

    # Single-step (T = 1) path == the PyTorch module's forward() exactly.
    out1, h1 = char_rnn_forward(xs[:1], hidden0, packed)
    r1, rh1 = _reference(xs[:1], hidden0, params)
    assert jnp.allclose(jax.block_until_ready(out1), r1, atol=1e-5, rtol=1e-5)
    assert jnp.allclose(jax.block_until_ready(h1), rh1, atol=1e-5, rtol=1e-5)

    print("KERNEL_OK")
</pallas_src>

<mosaic_0001>
module attributes {stable_mosaic.version = 11 : i64} {
  func.func @_char_rnn_kernel(%arg0: i32, %arg1: memref<8x128xf32, #tpu.memory_space<vmem>>, %arg2: memref<1x128xf32, #tpu.memory_space<vmem>>, %arg3: memref<264x128xf32, #tpu.memory_space<vmem>>, %arg4: memref<8x128xf32, #tpu.memory_space<vmem>>, %arg5: memref<1x128xf32, #tpu.memory_space<vmem>>, %arg6: memref<1x128xf32, #tpu.memory_space<vmem>>) attributes {dimension_semantics = [#tpu.dimension_semantics<arbitrary>], iteration_bounds = array<i64: 8>, scalar_prefetch = 0 : i64, scratch_operands = 1 : i64, tpu.core_type = #tpu.core_type<tc>, window_params = [{pipeline_mode = #tpu.pipeline_mode<synchronous>, transform_indices = @transform_0, window_bounds = array<i64: 8, 128>}, {pipeline_mode = #tpu.pipeline_mode<synchronous>, transform_indices = @transform_1, window_bounds = array<i64: 1, 128>}, {pipeline_mode = #tpu.pipeline_mode<synchronous>, transform_indices = @transform_2, window_bounds = array<i64: 264, 128>}, {pipeline_mode = #tpu.pipeline_mode<synchronous>, transform_indices = @transform_3, window_bounds = array<i64: 8, 128>}, {pipeline_mode = #tpu.pipeline_mode<synchronous>, transform_indices = @transform_4, window_bounds = array<i64: 1, 128>}]} {
    %c0_i32 = arith.constant 0 : i32
    %0 = arith.cmpi eq, %arg0, %c0_i32 : i32
    %1 = arith.extui %0 : i1 to i32
    %c0_i32_0 = arith.constant 0 : i32
    %2 = arith.cmpi ne, %1, %c0_i32_0 : i32
    scf.if %2 {
      %c0_15 = arith.constant 0 : index
      %c0_16 = arith.constant 0 : index
      %32 = vector.load %arg2[%c0_15, %c0_16] : memref<1x128xf32, #tpu.memory_space<vmem>>, vector<1x128xf32>
      %c0_17 = arith.constant 0 : index
      %c0_18 = arith.constant 0 : index
      %33 = vector.load %arg6[%c0_17, %c0_18] : memref<1x128xf32, #tpu.memory_space<vmem>>, vector<1x128xf32>
      tpu.vector_store %arg6[%c0_17, %c0_18], %32 {strides = array<i32>} : memref<1x128xf32, #tpu.memory_space<vmem>>, vector<1x128xf32>,
    } else {
    }
    %3 = arith.index_cast %arg0 : i32 to index
    %c0 = arith.constant 0 : index
    %4 = vector.load %arg1[%3, %c0] : memref<8x128xf32, #tpu.memory_space<vmem>>, vector<1x128xf32>
    %c0_1 = arith.constant 0 : index
    %c0_2 = arith.constant 0 : index
    %5 = vector.load %arg6[%c0_1, %c0_2] : memref<1x128xf32, #tpu.memory_space<vmem>>, vector<1x128xf32>
    %6 = arith.addf %4, %5 : vector<1x128xf32>
    %c0_3 = arith.constant 0 : index
    %c0_4 = arith.constant 0 : index
    %7 = vector.load %arg3[%c0_3, %c0_4] : memref<264x128xf32, #tpu.memory_space<vmem>>, vector<128x128xf32>
    %c128 = arith.constant 128 : index
    %c0_5 = arith.constant 0 : index
    %8 = vector.load %arg3[%c128, %c0_5] : memref<264x128xf32, #tpu.memory_space<vmem>>, vector<1x128xf32>
    %cst = arith.constant dense<0.000000e+00> : vector<1x128xf32>
    %9 = tpu.matmul %6, %7, %cst {dimension_numbers = #tpu.dot_dimension_numbers<[1], [0], [0], [1], [0, 0, 1, 1], [], []>} : vector<1x128xf32>, vector<128x128xf32>, vector<1x128xf32> -> vector<1x128xf32>
    %10 = arith.addf %9, %8 : vector<1x128xf32>
    %11 = math.tanh %10 : vector<1x128xf32>
    %c0_6 = arith.constant 0 : index
    %c0_7 = arith.constant 0 : index
    %12 = vector.load %arg6[%c0_6, %c0_7] : memref<1x128xf32, #tpu.memory_space<vmem>>, vector<1x128xf32>
    tpu.vector_store %arg6[%c0_6, %c0_7], %11 {strides = array<i32>} : memref<1x128xf32, #tpu.memory_space<vmem>>, vector<1x128xf32>,
    %c136 = arith.constant 136 : index
    %c0_8 = arith.constant 0 : index
    %13 = vector.load %arg3[%c136, %c0_8] : memref<264x128xf32, #tpu.memory_space<vmem>>, vector<128x128xf32>
    %c129 = arith.constant 129 : index
    %c0_9 = arith.constant 0 : index
    %14 = vector.load %arg3[%c129, %c0_9] : memref<264x128xf32, #tpu.memory_space<vmem>>, vector<1x128xf32>
    %cst_10 = arith.constant dense<0.000000e+00> : vector<1x128xf32>
    %15 = tpu.matmul %11, %13, %cst_10 {dimension_numbers = #tpu.dot_dimension_numbers<[1], [0], [0], [1], [0, 0, 1, 1], [], []>} : vector<1x128xf32>, vector<128x128xf32>, vector<1x128xf32> -> vector<1x128xf32>
    %16 = arith.addf %15, %14 : vector<1x128xf32>
    %cst_11 = arith.constant dense<0xFF800000> : vector<1xf32>
    %17 = vector.multi_reduction <maximumf>, %16, %cst_11 [1] : vector<1x128xf32> to vector<1xf32>
    %18 = vector.shape_cast %17 : vector<1xf32> to vector<1x1xf32>
    %19 = vector.broadcast %18 : vector<1x1xf32> to vector<1x128xf32>
    %20 = arith.subf %16, %19 : vector<1x128xf32>
    %21 = math.exp %20 : vector<1x128xf32>
    %cst_12 = arith.constant dense<0.000000e+00> : vector<1xf32>
    %22 = vector.multi_reduction <add>, %21, %cst_12 [1] : vector<1x128xf32> to vector<1xf32>
    %23 = vector.shape_cast %22 : vector<1xf32> to vector<1x1xf32>
    %24 = tpu.reciprocal %23 : vector<1x1xf32> -> vector<1x1xf32>
    %25 = vector.broadcast %24 : vector<1x1xf32> to vector<1x128xf32>
    %26 = arith.mulf %21, %25 : vector<1x128xf32>
    %27 = arith.index_cast %arg0 : i32 to index
    %c0_13 = arith.constant 0 : index
    %28 = vector.load %arg4[%27, %c0_13] : memref<8x128xf32, #tpu.memory_space<vmem>>, vector<1x128xf32>
    tpu.vector_store %arg4[%27, %c0_13], %26 {strides = array<i32>} : memref<8x128xf32, #tpu.memory_space<vmem>>, vector<1x128xf32>,
    %c7_i32 = arith.constant 7 : i32
    %29 = arith.cmpi eq, %arg0, %c7_i32 : i32
    %30 = arith.extui %29 : i1 to i32
    %c0_i32_14 = arith.constant 0 : i32
    %31 = arith.cmpi ne, %30, %c0_i32_14 : i32
    scf.if %31 {
      %c0_15 = arith.constant 0 : index
      %c0_16 = arith.constant 0 : index
      %32 = vector.load %arg5[%c0_15, %c0_16] : memref<1x128xf32, #tpu.memory_space<vmem>>, vector<1x128xf32>
      tpu.vector_store %arg5[%c0_15, %c0_16], %11 {strides = array<i32>} : memref<1x128xf32, #tpu.memory_space<vmem>>, vector<1x128xf32>,
    } else {
    }
    return
  }
  func.func @transform_0(%arg0: i32) -> (i32, i32) {
    %c0_i32 = arith.constant 0 : i32
    %c0_i32_0 = arith.constant 0 : i32
    %c0_i32_1 = arith.constant 0 : i32
    return %c0_i32, %c0_i32_0 : i32, i32
  }
  func.func @transform_1(%arg0: i32) -> (i32, i32) {
    %c0_i32 = arith.constant 0 : i32
    %c0_i32_0 = arith.constant 0 : i32
    %c0_i32_1 = arith.constant 0 : i32
    return %c0_i32, %c0_i32_0 : i32, i32
  }
  func.func @transform_2(%arg0: i32) -> (i32, i32) {
    %c0_i32 = arith.constant 0 : i32
    %c0_i32_0 = arith.constant 0 : i32
    %c0_i32_1 = arith.constant 0 : i32
    return %c0_i32, %c0_i32_0 : i32, i32
  }
  func.func @transform_3(%arg0: i32) -> (i32, i32) {
    %c0_i32 = arith.constant 0 : i32
    %c0_i32_0 = arith.constant 0 : i32
    %c0_i32_1 = arith.constant 0 : i32
    return %c0_i32, %c0_i32_0 : i32, i32
  }
  func.func @transform_4(%arg0: i32) -> (i32, i32) {
    %c0_i32 = arith.constant 0 : i32
    %c0_i32_0 = arith.constant 0 : i32
    %c0_i32_1 = arith.constant 0 : i32
    return %c0_i32, %c0_i32_0 : i32, i32
  }
}

</mosaic_0001>

<bundles_post_ra>
// kernel: char_rnn_forward.1
= control target key start
LH: loop header
LB: loop body
LE: loop exit
PB: predicated region body
PF: predicated region fallthrough
CT: control target
= control target key end

     0   :  { %10 = vsyncpa [#allocation4], 0  ;;  %s844_s0 = inlined_call_operand.vmem [shape: f32[8,128], index: 0, kind: input, shape index: {}]   ;;  %s845_s1 = inlined_call_operand.vmem [shape: f32[1,128], index: 1, kind: input, shape index: {}]   ;;  %s846_s2 = inlined_call_operand.hbm [shape: f32[264,128], index: 2, kind: input, shape index: {}]   ;;  %s847_s3 = inlined_call_operand.hbm [shape: f32[8,128], index: 3, kind: output, shape index: {0}]   ;;  %s848_s4 = inlined_call_operand.vmem [shape: f32[1,128], index: 4, kind: output, shape index: {1}]  }
   0x1   :  { %11 = vsyncpa [#allocation5], 0  ;;  %s742_s15 = smov 0  }
   0x2 LB: > { %s748_s16 = sadd.s32 4294967295, %s708_s15   ;;  %p437_p0 = scmp.ge.s32.totalorder %s708_s15, 1  ;;  %s708_s15 = sphi %s742_s15, %s17_s15  }
   0x3   : > { %p127_p1 = scmp.lt.s32.totalorder %s708_s15, 9  ;;  %s710_s17 = smov [#allocation3]  }
   0x4   : > { %s145_s18 = sshll.u32 %s710_s17, 4  ;;  %p849_p4 = scmp.eq.s32.totalorder %s748_s16, 0  ;;  %s146_s18 = int_to_ptr.vmem [resolvable:$true] %s145_s18 }
   0x5   : > { %p753_p3 = pnand %p437_p0, %p127_p1  ;;  %s640_s23 = scalar_lea.hbm %s846_s2, 4224 }
   0x6   : > { %p641_p7 = scmp.ne.s32.totalorder %s846_s2, %s640_s23  ;;  %p647_p11 = scmp.lt.u32.totalorder %s640_s23, %s846_s2 }
   0x7   : > { %s851_s19 = scalar_select %p753_p3, 1, 0 }
   0x8   : > { %p611_p5 = pneg %p753_p3 }
   0xa   : > { %p762_p6 = pnand %p849_p4, %p611_p5 }
   0xc   : > { %p642_p8 = pneg %p762_p6 }
   0xe   : > { %p643_p9 = pnand %p642_p8, %p641_p7 }
  0x10   : > { %p644_p10 = pneg %p643_p9 }
  0x12   : > { %p649_p12 = pnand %p647_p11, %p644_p10 }
  0x14   : > { %652 = shalt.err (!%p649_p12)
}
  0x15   : > { %s653_s28 = scalar_lea.vmem %s146_s18, 4224  ;;  %p661_p5 = scmp.lt.s32.totalorder %s146_s18, %s146_s18 }
  0x16   : > { %p654_p13 = scmp.ne.s32.totalorder %s146_s18, %s653_s28  ;;  %p662_p2 = scmp.lt.s32.totalorder %s653_s28, %s653_s28 }
  0x18   : > { %p656_p0 = pnand %p654_p13, %p642_p8  ;;  %p663_p4 = por %p662_p2, %p661_p5 }
  0x1a   : > { %p657_p1 = pneg %p656_p0 }
  0x1c   : > { %p664_p3 = pnand %p663_p4, %p657_p1 }
  0x1e   : > { %667 = shalt.err (!%p664_p3)
}
  0x1f   : > { %s711_s29 = smov 128   ;;  %s712_s30 = smov 8  }
  0x20   : > { %614 = dma.hbm_to_vmem [thread:$0]  (!%p762_p6), %s846_s2, 4224, %s146_s18, [#allocation4], %s711_s29, %s711_s29, %s712_s30  }
  0x21   : > { %p853_p7 = scmp.ne.s32.totalorder %s851_s19, 0 }
  0x22   : > { %p854_p9 = scmp.eq.s32.totalorder (!%p853_p7), %s748_s16, 0 }
  0x23   : > { %161 = sbr.rel (%p853_p7) target bundleno = 865 (0x361), region = 32 }
  0x2a   : > { %699 = dma.done.wait (%p854_p9), [#allocation4], 4224   ;;  %p855_p8 = pmov %p854_p9 }
  0x2b   : > { %p856_p2 = scmp.ne.s32.totalorder %s748_s16, 0 }
  0x2c   : > { %701 = vsyncadd (%p855_p8), [#allocation4], 4294963072  ;;  %v181_v0 = vld [vmem:[%s845_s1] sm:$0x1] (!%p856_p2) }
  0x2d   : > { %180 = sbr.rel (%p856_p2) target bundleno = 52 (0x34), region = 40  ;;  %182 = vst [vmem:[#allocation2] sm:$0x1] (!%p856_p2), %v181_v0 }
  0x34 PF: > { %v187_v1 = vld [vmem:[#allocation3] sm:$0xff]  ;;  %v188_v2 = vld [vmem:[#allocation3 + $0x8] sm:$0xff]  ;;  %v189_v3 = vld [vmem:[#allocation3 + $0x10] sm:$0xff]  ;;  %v713_v4 = vmov 0.0|0.0   ;;  %vm714_vm0 = vmmov 0   ;;  %v715_v7 = vmov 0.0   ;;  %s183_s11 = scalar_lea.vmem %s844_s0, %s748_s16 }
  0x35   : > { %555 = vmatprep.subr.bf16.mxu0 %v713_v4  ;;  %v556_v5 = vpack.c.bf16 %v188_v2, %v187_v1  ;;  %v190_v6 = vld [vmem:[#allocation3 + $0x18] sm:$0xff]  ;;  %517 = vmatprep.mubr.msk.f32.mxu0 %vm714_vm0, %v715_v7  ;;  %v191_v9 = vld [vmem:[#allocation3 + $0x20] sm:$0xff]  ;;  %v192_v10 = vld [vmem:[#allocation3 + $0x28] sm:$0xff]  ;;  %vm363_vm1 = vcmask 1040384   ;;  %s448_s12 = scalar_lea.vmem [#allocation6], %s708_s15  ;;  %p443_p3 = scmp.ne.s32.totalorder %s748_s16, 7 }
  0x36   : > { %579 = vmatprep.subr.bf16.mxu1 %v713_v4  ;;  %552 = vmatprep.mubr.msk.f32.mxu1 %vm714_vm0, %v715_v7  ;;  %v559_v8 = vpack.c.bf16 %v190_v6, %v189_v3  ;;  %v276_v11 = vld [vmem:[#allocation3 + $0x88] sm:$0xff]  ;;  %v277_v12 = vld [vmem:[#allocation3 + $0x90] sm:$0xff]  ;;  %v278_v13 = vld [vmem:[#allocation3 + $0x98] sm:$0xff]  ;;  %v562_v14 = vpack.c.bf16 %v192_v10, %v191_v9 }
  0x37   : > { %557 = vmatpush3.bf16.msra.mxu0 %v556_v5  ;;  %v580_v15 = vpack.c.bf16 %v277_v12, %v276_v11  ;;  %v279_v16 = vld [vmem:[#allocation3 + $0xa0] sm:$0xff]  ;;  %v193_v17 = vld [vmem:[#allocation3 + $0x30] sm:$0xff]  ;;  %v194_v18 = vld [vmem:[#allocation3 + $0x38] sm:$0xff] }
  0x38   : > { %558 = vmatprep.subr.bf16.mxu0 %v713_v4  ;;  %v583_v19 = vpack.c.bf16 %v279_v16, %v278_v13  ;;  %v280_v20 = vld [vmem:[#allocation3 + $0xa8] sm:$0xff]  ;;  %v281_v21 = vld [vmem:[#allocation3 + $0xb0] sm:$0xff]  ;;  %v565_v22 = vpack.c.bf16 %v194_v18, %v193_v17  ;;  %v195_v23 = vld [vmem:[#allocation3 + $0x40] sm:$0xff] }
  0x39   : > { %581 = vmatpush3.bf16.msra.mxu1 %v580_v15  ;;  %v196_v24 = vld [vmem:[#allocation3 + $0x48] sm:$0xff]  ;;  %v586_v25 = vpack.c.bf16 %v281_v21, %v280_v20  ;;  %v282_v26 = vld [vmem:[#allocation3 + $0xb8] sm:$0xff]  ;;  %v283_v27 = vld [vmem:[#allocation3 + $0xc0] sm:$0xff] }
  0x3a   : > { %582 = vmatprep.subr.bf16.mxu1 %v713_v4  ;;  %v568_v28 = vpack.c.bf16 %v196_v24, %v195_v23  ;;  %v197_v29 = vld [vmem:[#allocation3 + $0x50] sm:$0xff]  ;;  %v198_v30 = vld [vmem:[#allocation3 + $0x58] sm:$0xff]  ;;  %v589_v31 = vpack.c.bf16 %v283_v27, %v282_v26  ;;  %v284_v32 = vld [vmem:[#allocation3 + $0xc8] sm:$0xff] }
  0x3b   : > { %560 = vmatpush3.bf16.msra.mxu0 %v559_v8  ;;  %v285_v33 = vld [vmem:[#allocation3 + $0xd0] sm:$0xff]  ;;  %v571_v34 = vpack.c.bf16 %v198_v30, %v197_v29  ;;  %v199_v35 = vld [vmem:[#allocation3 + $0x60] sm:$0xff]  ;;  %v200_v36 = vld [vmem:[#allocation3 + $0x68] sm:$0xff] }
  0x3c   : > { %561 = vmatprep.subr.bf16.mxu0 %v713_v4  ;;  %v592_v37 = vpack.c.bf16 %v285_v33, %v284_v32  ;;  %v574_v38 = vpack.c.bf16 %v200_v36, %v199_v35  ;;  %v201_v39 = vld [vmem:[#allocation3 + $0x70] sm:$0xff]  ;;  %v202_v40 = vld [vmem:[#allocation3 + $0x78] sm:$0xff]  ;;  %v287_v46 = vld [vmem:[#allocation3 + $0xe0] sm:$0xff] }
  0x3d   : > { %584 = vmatpush3.bf16.msra.mxu1 %v583_v19  ;;  %v577_v41 = vpack.c.bf16 %v202_v40, %v201_v39  ;;  %v184_v42 = vld [vmem:[%s183_s11] sm:$0x1]  ;;  %v288_v48 = vld [vmem:[#allocation3 + $0xe8] sm:$0xff]  ;;  %v289_v49 = vld [vmem:[#allocation3 + $0xf0] sm:$0xff] }
  0x3e   : > { %585 = vmatprep.subr.bf16.mxu1 %v713_v4  ;;  %v185_v43 = vld [vmem:[#allocation2] sm:$0x1]  ;;  %v598_v50 = vpack.c.bf16 %v289_v49, %v288_v48  ;;  %v291_v52 = vld [vmem:[#allocation3 + $0x100] sm:$0xff] }
  0x3f   : > { %563 = vmatpush3.bf16.msra.mxu0 %v562_v14  ;;  %v186_v44 = vadd.f32 %v185_v43, %v184_v42  ;;  %v286_v45 = vld [vmem:[#allocation3 + $0xd8] sm:$0xff]  ;;  %v203_v54 = vld [vmem:[#allocation3 + $0x80] sm:$0x1]  ;;  %v292_v59 = vld [vmem:[#allocation3 + $0x81] sm:$0x1] }
  0x40   : > { %564 = vmatprep.subr.bf16.mxu0 %v713_v4  ;;  %v595_v47 = vpack.c.bf16 %v287_v46, %v286_v45  ;;  %v290_v51 = vld [vmem:[#allocation3 + $0xf8] sm:$0xff] }
  0x41   : > { %587 = vmatpush3.bf16.msra.mxu1 %v586_v25  ;;  %v601_v53 = vpack.c.bf16 %v291_v52, %v290_v51 }
  0x42   : > { %588 = vmatprep.subr.bf16.mxu1 %v713_v4 }
  0x43   : > { %566 = vmatpush3.bf16.msra.mxu0 %v565_v22 }
  0x44   : > { %567 = vmatprep.subr.bf16.mxu0 %v713_v4 }
  0x45   : > { %590 = vmatpush3.bf16.msra.mxu1 %v589_v31 }
  0x46   : > { %591 = vmatprep.subr.bf16.mxu1 %v713_v4 }
  0x47   : > { %569 = vmatpush3.bf16.msra.mxu0 %v568_v28 }
  0x48   : > { %570 = vmatprep.subr.bf16.mxu0 %v713_v4 }
  0x49   : > { %593 = vmatpush3.bf16.msra.mxu1 %v592_v37 }
  0x4a   : > { %594 = vmatprep.subr.bf16.mxu1 %v713_v4 }
  0x4b   : > { %572 = vmatpush3.bf16.msra.mxu0 %v571_v34 }
  0x4c   : > { %573 = vmatprep.subr.bf16.mxu0 %v713_v4 }
  0x4d   : > { %596 = vmatpush3.bf16.msra.mxu1 %v595_v47 }
  0x4e   : > { %597 = vmatprep.subr.bf16.mxu1 %v713_v4 }
  0x4f   : > { %575 = vmatpush3.bf16.msra.mxu0 %v574_v38 }
  0x50   : > { %576 = vmatprep.subr.bf16.mxu0 %v713_v4 }
  0x51   : > { %599 = vmatpush3.bf16.msra.mxu1 %v598_v50 }
  0x52   : > { %600 = vmatprep.subr.bf16.mxu1 %v713_v4 }
  0x53   : > { %578 = vmatpush3.bf16.msra.mxu0 %v577_v41 }
  0x55   : > { %602 = vmatpush3.bf16.msra.mxu1 %v601_v53 }
  0x56   : > { %518 = vmatmul.mubr.f32.vlgmr.msra.gmra.mrb[0].mxu0 %v186_v44 }
 0x129   : > { %v270_v55 = vpop.f32.mrb[0].mxu0 }
 0x12a   : > { %v271_v56 = vadd.f32 %v270_v55, %v203_v54  ;;  %v519_v57 = vpop.f32.mrb[1].mxu0 }
 0x12c   : > { %634 = vtanh.f32 %v271_v56 }
 0x136   : > { %v635_v58 = vpop.eup %634 }
 0x137   : > { %275 = vst [vmem:[#allocation2] sm:$0x1] %v635_v58  ;;  %553 = vmatmul.mubr.f32.vlgmr.msra.gmra.mrb[0].mxu1 %v635_v58  ;;  %381 = vst [vmem:[%s848_s4] sm:$0x1] (!%p443_p3), %v635_v58 }
 0x20a   : > { %v359_v60 = vpop.f32.mrb[0].mxu1 }
 0x20b   : > { %v360_v61 = vadd.f32 %v359_v60, %v292_v59  ;;  %v554_v62 = vpop.f32.mrb[1].mxu1 }
 0x20d   : > { %v364_v63 = vsel %vm363_vm1, %v360_v61, -inf }
 0x20e   : > { %365 = vmax.xlane.f32.xlu0 %v364_v63 }
 0x29b   : > { %v366_v0 = vpop.xlane.xlu0 %365 }
 0x29c   : > { %v367_v1 = vsub.f32 %v360_v61, %v366_v0 }
 0x29e   : > { %v368_v2 = vmul.f32 1.442695, %v367_v1 }
 0x2a0   : > { %636 = vpow2.f32 %v368_v2 }
 0x2aa   : > { %v637_v3 = vpop.eup %636 }
 0x2ab   : > { %v370_v4 = vsel %vm363_vm1, %v637_v3, 0.0 }
 0x2ac   : > { %371 = vadd.xlane.f32.xlu0 %v370_v4 }
 0x339   : > { %v372_v5 = vpop.xlane.xlu0 %371 }
 0x33a   : > { %638 = vrcp.f32 %v372_v5 }
 0x341   : > { %380 = sbr.rel (%p443_p3) target bundleno = 840 (0x348), region = 44 }
 0x344   : > { %v639_v6 = vpop.eup %638 }
 0x345   : > { %v374_v7 = vmul.f32 %v639_v6, %v637_v3 }
 0x347   : > { %450 = vst [vmem:[%s448_s12 - $0x1] sm:$0x1] %v374_v7 }
 0x348 PF: > { %p617_p4 = scmp.eq.s32.totalorder %s748_s16, 7  ;;  %s716_s17 = smov [#allocation6]  }
 0x349   : > { %s389_s18 = sshll.u32 %s716_s17, 4  ;;  %s390_s18 = int_to_ptr.vmem [resolvable:$true] %s389_s18 }
 0x34a   : > { %s668_s19 = scalar_lea.vmem %s390_s18, 128  ;;  %p675_p12 = scmp.lt.s32.totalorder %s390_s18, %s390_s18 }
 0x34b   : > { %p669_p6 = scmp.ne.s32.totalorder %s390_s18, %s668_s19  ;;  %p676_p13 = scmp.lt.s32.totalorder %s668_s19, %s668_s19 }
 0x34d   : > { %p670_p10 = pnand %p669_p6, %p617_p4  ;;  %p677_p0 = por %p676_p13, %p675_p12 }
 0x34f   : > { %p671_p11 = pneg %p670_p10 }
 0x351   : > { %p678_p1 = pnand %p677_p0, %p671_p11 }
 0x353   : > { %681 = shalt.err (!%p678_p1)
}
 0x354   : > { %s682_s22 = scalar_lea.hbm %s847_s3, 128 }
 0x355   : > { %p683_p5 = scmp.ne.s32.totalorder %s847_s3, %s682_s22  ;;  %p688_p8 = scmp.lt.u32.totalorder %s682_s22, %s847_s3 }
 0x357   : > { %p684_p7 = pnand %p683_p5, %p617_p4 }
 0x359   : > { %p685_p9 = pneg %p684_p7 }
 0x35b   : > { %p690_p2 = pnand %p688_p8, %p685_p9 }
 0x35d   : > { %693 = shalt.err (!%p690_p2)
}
 0x35e   : > { %608 = dma.vmem_to_hbm [thread:$0]  (%p617_p4), %s390_s18, 128, %s847_s3, [#allocation5]  }
 0x35f   : > { %703 = dma.done.wait (%p617_p4), [#allocation5], 128  }
 0x360   : > { %705 = vsyncadd (%p617_p4), [#allocation5], 4294967168 }
 0x361 PF: > { %s17_s15 = sadd.s32 1, %s708_s15  }
 0x362   : > { %p14_p3 = scmp.ge.s32.totalorder %s17_s15, 10  }
 0x364   :  { %16 = sbr.rel (!%p14_p3) target bundleno = 2 (0x2), region = 79 }
 0x36b   :  { %408 = vsyncpa [#allocation4], 1 }
 0x36c   :  { %410 = vsyncpa [#allocation4 + $0x1], 1 }
 0x36d   :  { %411 = vsyncpa [#allocation5], 1 }
 0x36e   :  { %413 = vsyncpa [#allocation5 + $0x1], 1 }

</bundles_post_ra>
